<compile_context>
chip_gen: v7x
topology: tpu7x:2x2x1
jax: 0.10.0
libtpu: 0.0.40
codegen_flags: <defaults>
</compile_context>

<pallas_src>
import functools

import jax
import jax.numpy as jnp
from jax.experimental import pallas as pl
from jax.experimental.pallas import tpu as pltpu


def _round_up(n: int, m: int) -> int:
    return ((n + m - 1) // m) * m


def _pack_factor(input_size: int) -> int:
    """How many logical rows fit in one 128-lane vreg row (1 if input_size doesn't divide 128)."""
    if 0 < input_size < 128 and 128 % input_size == 0:
        return 128 // input_size
    return 1


def fuse_params(w1_t, b1, w2_t, b2, input_size: int, output_size: int):
    """Build the packed block-diagonal fused weight / bias.  Call ONCE, outside the hot path.

    Column layout: the `pack` sigmoid heads occupy columns [0, pack*output_size), the `pack`
    relu heads occupy the last `pack` columns, so the post-kernel unpack is a free reshape.
    """
    pack = _pack_factor(input_size)
    eye = jnp.eye(pack, dtype=jnp.float32)
    w_sig = jnp.kron(eye, w1_t.astype(jnp.float32))     # (pack*D_in, pack*D_out)
    w_relu = jnp.kron(eye, w2_t.astype(jnp.float32))    # (pack*D_in, pack)
    w_fused = jnp.concatenate([w_sig, w_relu], axis=1)  # (pack*D_in, pack*(D_out+1))
    b_fused = jnp.concatenate(
        [jnp.tile(b1.astype(jnp.float32), (1, pack)),
         jnp.tile(b2.astype(jnp.float32), (1, pack))], axis=1)
    return w_fused, b_fused


def _packed_fused_kernel(x_ref, w_ref, b_ref, sig_ref, relu_ref, *, n_sig_cols: int):
    """One MXU pass: (TB, pack*D_in) @ (pack*D_in, pack*(D_out+1)) + bias, then per-head act."""
    h = jnp.dot(x_ref[...], w_ref[...], preferred_element_type=jnp.float32)
    h = h + b_ref[...]
    sig_ref[...] = jax.nn.sigmoid(h[:, :n_sig_cols])        # packed linear1 heads
    relu_ref[...] = jnp.maximum(h[:, n_sig_cols:], 0.0)     # packed linear2 heads


@functools.partial(jax.jit, static_argnames=("input_size", "output_size", "tile_rows"))
def test_parameters_forward(x, w_fused, b_fused, *, input_size: int, output_size: int,
                            tile_rows: int = 4096):
    """Pallas forward matching torch TestParameters.forward.

    x: any shape flattening to (-1, input_size) (row-major, same as torch .view()).
    w_fused / b_fused: from fuse_params() (built once).
    Returns (sigmoid(linear1(x)), relu(linear2(x))) -- same order as the torch module.
    """
    pack = _pack_factor(input_size)
    x2d = x.reshape(-1, input_size).astype(jnp.float32)
    batch = x2d.shape[0]

    # tiny pad only so the 4-row packing is a pure reshape (no-op when batch % pack == 0)
    padded_batch = _round_up(batch, pack)
    if padded_batch != batch:
        x2d = jnp.pad(x2d, ((0, padded_batch - batch), (0, 0)))
    n_packed = padded_batch // pack
    xp = x2d.reshape(n_packed, pack * input_size)

    n_sig_cols = pack * output_size
    fused_cols = n_sig_cols + pack

    # Packed-row tile: multiple of 8 sublanes, >=2 grid steps when possible (megacore on v7x),
    # capped by tile_rows (VMEM per tile ~3 MiB double-buffered at 4096).  Ragged last block is
    # handled by Pallas (masked output writes) -- no extra pad/slice passes over the data.
    if n_packed <= 8:
        tb = n_packed
    else:
        tb = min(_round_up(tile_rows, 8), _round_up(pl.cdiv(n_packed, 2), 8))
        tb = max(tb, 8)
    grid = (pl.cdiv(n_packed, tb),)

    flops = 2 * n_packed * (pack * input_size) * fused_cols
    bytes_accessed = (n_packed * (pack * input_size + fused_cols) * 4
                      + (pack * input_size + 1) * fused_cols * 4)
    transcendentals = n_packed * n_sig_cols

    kernel = functools.partial(_packed_fused_kernel, n_sig_cols=n_sig_cols)

    out_sig_p, out_relu_p = pl.pallas_call(
        kernel,
        out_shape=(jax.ShapeDtypeStruct((n_packed, n_sig_cols), jnp.float32),
                   jax.ShapeDtypeStruct((n_packed, pack), jnp.float32)),
        grid=grid,
        in_specs=[
            pl.BlockSpec((tb, pack * input_size), lambda i: (i, 0)),          # x tile (pipelined)
            pl.BlockSpec((pack * input_size, fused_cols), lambda i: (0, 0)),  # fused weight, resident
            pl.BlockSpec((1, fused_cols), lambda i: (0, 0)),                  # fused bias, resident
        ],
        out_specs=(
            pl.BlockSpec((tb, n_sig_cols), lambda i: (i, 0)),
            pl.BlockSpec((tb, pack), lambda i: (i, 0)),
        ),
        compiler_params=pltpu.CompilerParams(
            dimension_semantics=("parallel",),          # shard batch tiles across TCs on v7x
        ),
        cost_estimate=pl.CostEstimate(
            flops=flops,
            transcendentals=transcendentals,
            bytes_accessed=bytes_accessed,
        ),
    )(xp, w_fused, b_fused)

    # contiguous (metadata-only) unpack back to logical rows
    out_sig = out_sig_p.reshape(padded_batch, output_size)
    out_relu = out_relu_p.reshape(padded_batch, 1)
    if padded_batch != batch:
        out_sig = out_sig[:batch]
        out_relu = out_relu[:batch]
    return out_sig, out_relu


def init_params(key, input_size, output_size):
    """Deterministic init mimicking torch nn.Linear default (uniform +-1/sqrt(fan_in)).

    Weights are stored pre-transposed as (in, out) so the kernel computes x @ W.
    """
    k1, k2, k3, k4 = jax.random.split(key, 4)
    bound = 1.0 / (input_size ** 0.5)
    w1_t = jax.random.uniform(k1, (input_size, output_size), jnp.float32, -bound, bound)
    b1 = jax.random.uniform(k2, (1, output_size), jnp.float32, -bound, bound)
    w2_t = jax.random.uniform(k3, (input_size, 1), jnp.float32, -bound, bound)
    b2 = jax.random.uniform(k4, (1, 1), jnp.float32, -bound, bound)
    return w1_t, b1, w2_t, b2


# TODO(synk): gradient_update (Adam step + grad clipping) and the forward/update counters are
# training-side / Python-state logic, not part of the forward pass; not implemented as kernels.

if __name__ == "__main__":
    input_size = 32
    output_size = 16

    key = jax.random.PRNGKey(0)
    kx, kp, kx2, kx3 = jax.random.split(key, 4)
    w1_t, b1, w2_t, b2 = init_params(kp, input_size, output_size)
    # fuse once, outside the per-call path
    w_fused, b_fused = fuse_params(w1_t, b1, w2_t, b2, input_size, output_size)

    # --- small case: (2, 4, 32) flattened by .view(-1, input_size) -> (8, 32) -> 2 packed rows
    x = jax.random.normal(kx, (2, 4, input_size), dtype=jnp.float32)
    out_sig, out_relu = test_parameters_forward(
        x, w_fused, b_fused, input_size=input_size, output_size=output_size
    )
    jax.block_until_ready((out_sig, out_relu))

    x2d = x.reshape(-1, input_size)
    ref_sig = jax.nn.sigmoid(x2d @ w1_t + b1)
    ref_relu = jnp.maximum(x2d @ w2_t + b2, 0.0)
    assert out_sig.shape == (8, output_size) and out_relu.shape == (8, 1)
    assert jnp.allclose(out_sig, ref_sig, atol=1e-5)
    assert jnp.allclose(out_relu, ref_relu, atol=1e-5)

    # --- multi-tile case: batch 300 -> 75 packed rows, tile_rows=128 gives tb=40, grid=(2,)
    #     with a ragged last block (exercises masked edge writes, no pad/slice passes).
    xb = jax.random.normal(kx2, (300, input_size), dtype=jnp.float32)
    out_sig_b, out_relu_b = test_parameters_forward(
        xb, w_fused, b_fused, input_size=input_size, output_size=output_size, tile_rows=128
    )
    jax.block_until_ready((out_sig_b, out_relu_b))
    ref_sig_b = jax.nn.sigmoid(xb @ w1_t + b1)
    ref_relu_b = jnp.maximum(xb @ w2_t + b2, 0.0)
    assert out_sig_b.shape == (300, output_size) and out_relu_b.shape == (300, 1)
    assert jnp.allclose(out_sig_b, ref_sig_b, atol=1e-5)
    assert jnp.allclose(out_relu_b, ref_relu_b, atol=1e-5)

    # --- batch not divisible by the pack factor (10 rows -> padded to 12, sliced back)
    xc = jax.random.normal(kx3, (10, input_size), dtype=jnp.float32)
    out_sig_c, out_relu_c = test_parameters_forward(
        xc, w_fused, b_fused, input_size=input_size, output_size=output_size
    )
    jax.block_until_ready((out_sig_c, out_relu_c))
    ref_sig_c = jax.nn.sigmoid(xc @ w1_t + b1)
    ref_relu_c = jnp.maximum(xc @ w2_t + b2, 0.0)
    assert out_sig_c.shape == (10, output_size) and out_relu_c.shape == (10, 1)
    assert jnp.allclose(out_sig_c, ref_sig_c, atol=1e-5)
    assert jnp.allclose(out_relu_c, ref_relu_c, atol=1e-5)

    print("KERNEL_OK")
</pallas_src>

<mosaic_0001>
module attributes {stable_mosaic.version = 11 : i64} {
  func.func @_packed_fused_kernel(%arg0: i32, %arg1: memref<2x128xf32, #tpu.memory_space<vmem>>, %arg2: memref<128x68xf32, #tpu.memory_space<vmem>>, %arg3: memref<1x68xf32, #tpu.memory_space<vmem>>, %arg4: memref<2x64xf32, #tpu.memory_space<vmem>>, %arg5: memref<2x4xf32, #tpu.memory_space<vmem>>) attributes {dimension_semantics = [#tpu.dimension_semantics<parallel>], iteration_bounds = array<i64: 1>, scalar_prefetch = 0 : i64, scratch_operands = 0 : i64, tpu.core_type = #tpu.core_type<tc>, window_params = [{transform_indices = @transform_0, window_bounds = array<i64: 2, 128>}, {pipeline_mode = #tpu.pipeline_mode<synchronous>, transform_indices = @transform_1, window_bounds = array<i64: 128, 68>}, {pipeline_mode = #tpu.pipeline_mode<synchronous>, transform_indices = @transform_2, window_bounds = array<i64: 1, 68>}, {transform_indices = @transform_3, window_bounds = array<i64: 2, 64>}, {transform_indices = @transform_4, window_bounds = array<i64: 2, 4>}]} {
    %c0 = arith.constant 0 : index
    %c0_0 = arith.constant 0 : index
    %0 = vector.load %arg1[%c0, %c0_0] : memref<2x128xf32, #tpu.memory_space<vmem>>, vector<2x128xf32>
    %c0_1 = arith.constant 0 : index
    %c0_2 = arith.constant 0 : index
    %1 = vector.load %arg2[%c0_1, %c0_2] : memref<128x68xf32, #tpu.memory_space<vmem>>, vector<128x68xf32>
    %cst = arith.constant dense<0.000000e+00> : vector<2x68xf32>
    %2 = tpu.matmul %0, %1, %cst {dimension_numbers = #tpu.dot_dimension_numbers<[1], [0], [0], [1], [0, 0, 1, 1], [], []>} : vector<2x128xf32>, vector<128x68xf32>, vector<2x68xf32> -> vector<2x68xf32>
    %c0_3 = arith.constant 0 : index
    %c0_4 = arith.constant 0 : index
    %3 = vector.load %arg3[%c0_3, %c0_4] : memref<1x68xf32, #tpu.memory_space<vmem>>, vector<1x68xf32>
    %4 = vector.broadcast %3 : vector<1x68xf32> to vector<2x68xf32>
    %5 = arith.addf %2, %4 : vector<2x68xf32>
    %6 = vector.extract_strided_slice %5 {offsets = [0, 0], sizes = [2, 64], strides = [1, 1]} : vector<2x68xf32> to vector<2x64xf32>
    %7 = arith.negf %6 : vector<2x64xf32>
    %8 = math.exp %7 : vector<2x64xf32>
    %cst_5 = arith.constant 1.000000e+00 : f32
    %9 = vector.broadcast %cst_5 : f32 to vector<2x64xf32>
    %10 = arith.addf %9, %8 : vector<2x64xf32>
    %11 = arith.divf %9, %10 : vector<2x64xf32>
    %c0_6 = arith.constant 0 : index
    %c0_7 = arith.constant 0 : index
    %12 = vector.load %arg4[%c0_6, %c0_7] : memref<2x64xf32, #tpu.memory_space<vmem>>, vector<2x64xf32>
    tpu.vector_store %arg4[%c0_6, %c0_7], %11 {strides = array<i32>} : memref<2x64xf32, #tpu.memory_space<vmem>>, vector<2x64xf32>,
    %13 = vector.extract_strided_slice %5 {offsets = [0, 64], sizes = [2, 4], strides = [1, 1]} : vector<2x68xf32> to vector<2x4xf32>
    %cst_8 = arith.constant 0.000000e+00 : f32
    %14 = vector.broadcast %cst_8 : f32 to vector<2x4xf32>
    %15 = arith.maximumf %13, %14 : vector<2x4xf32>
    %c0_9 = arith.constant 0 : index
    %c0_10 = arith.constant 0 : index
    %16 = vector.load %arg5[%c0_9, %c0_10] : memref<2x4xf32, #tpu.memory_space<vmem>>, vector<2x4xf32>
    tpu.vector_store %arg5[%c0_9, %c0_10], %15 {strides = array<i32>} : memref<2x4xf32, #tpu.memory_space<vmem>>, vector<2x4xf32>,
    return
  }
  func.func @transform_0(%arg0: i32) -> (i32, i32) {
    %c0_i32 = arith.constant 0 : i32
    %c0_i32_0 = arith.constant 0 : i32
    return %arg0, %c0_i32 : i32, i32
  }
  func.func @transform_1(%arg0: i32) -> (i32, i32) {
    %c0_i32 = arith.constant 0 : i32
    %c0_i32_0 = arith.constant 0 : i32
    %c0_i32_1 = arith.constant 0 : i32
    return %c0_i32, %c0_i32_0 : i32, i32
  }
  func.func @transform_2(%arg0: i32) -> (i32, i32) {
    %c0_i32 = arith.constant 0 : i32
    %c0_i32_0 = arith.constant 0 : i32
    %c0_i32_1 = arith.constant 0 : i32
    return %c0_i32, %c0_i32_0 : i32, i32
  }
  func.func @transform_3(%arg0: i32) -> (i32, i32) {
    %c0_i32 = arith.constant 0 : i32
    %c0_i32_0 = arith.constant 0 : i32
    return %arg0, %c0_i32 : i32, i32
  }
  func.func @transform_4(%arg0: i32) -> (i32, i32) {
    %c0_i32 = arith.constant 0 : i32
    %c0_i32_0 = arith.constant 0 : i32
    return %arg0, %c0_i32 : i32, i32
  }
}

</mosaic_0001>

<bundles_post_ra>
// kernel: test_parameters_forward.1
= control target key start
LH: loop header
LB: loop body
LE: loop exit
PB: predicated region body
PF: predicated region fallthrough
CT: control target
= control target key end

     0   :  { %v219_v0 = vmov 0.0|0.0   ;;  %vm220_vm0 = vmmov 0   ;;  %v221_v4 = vmov 0.0   ;;  %vm116_vm1 = vcmask 517120   ;;  %s308_s1 = inlined_call_operand.vmem [shape: f32[128,68], index: 1, kind: input, shape index: {}]   ;;  %s309_s0 = inlined_call_operand.vmem [shape: f32[2,128], index: 0, kind: input, shape index: {}]   ;;  %s310_s2 = inlined_call_operand.vmem [shape: f32[1,68], index: 2, kind: input, shape index: {}]   ;;  %s311_s3 = inlined_call_operand.vmem [shape: f32[2,64], index: 3, kind: output, shape index: {0}]   ;;  %s312_s4 = inlined_call_operand.vmem [shape: f32[2,4], index: 4, kind: output, shape index: {1}]  }
   0x1   :  { %187 = vmatprep.subr.bf16.mxu0 %v219_v0  ;;  %v17_v1 = vld [vmem:[%s308_s1] sm:$0xff]  ;;  %v18_v2 = vld [vmem:[%s308_s1 + $0x8] sm:$0xff]  ;;  %v19_v3 = vld [vmem:[%s308_s1 + $0x10] sm:$0xff]  ;;  %184 = vmatprep.mubr.msk.f32.mxu0 %vm220_vm0, %v221_v4  ;;  %vm123_vm2 = vcmask 25600  }
   0x2   :  { %v188_v5 = vpack.c.bf16 %v18_v2, %v17_v1  ;;  %v20_v6 = vld [vmem:[%s308_s1 + $0x18] sm:$0xff]  ;;  %v21_v8 = vld [vmem:[%s308_s1 + $0x20] sm:$0xff]  ;;  %v22_v9 = vld [vmem:[%s308_s1 + $0x28] sm:$0xff] }
   0x3   :  { %v191_v7 = vpack.c.bf16 %v20_v6, %v19_v3  ;;  %v194_v10 = vpack.c.bf16 %v22_v9, %v21_v8  ;;  %v23_v11 = vld [vmem:[%s308_s1 + $0x30] sm:$0xff]  ;;  %v24_v12 = vld [vmem:[%s308_s1 + $0x38] sm:$0xff]  ;;  %v25_v14 = vld [vmem:[%s308_s1 + $0x40] sm:$0xff] }
   0x4   :  { %189 = vmatpush3.bf16.msra.mxu0 %v188_v5  ;;  %v197_v13 = vpack.c.bf16 %v24_v12, %v23_v11  ;;  %v26_v15 = vld [vmem:[%s308_s1 + $0x48] sm:$0xff]  ;;  %v27_v17 = vld [vmem:[%s308_s1 + $0x50] sm:$0xff]  ;;  %v28_v18 = vld [vmem:[%s308_s1 + $0x58] sm:$0xff] }
   0x5   :  { %190 = vmatprep.subr.bf16.mxu0 %v219_v0  ;;  %v200_v16 = vpack.c.bf16 %v26_v15, %v25_v14  ;;  %v203_v19 = vpack.c.bf16 %v28_v18, %v27_v17  ;;  %v29_v20 = vld [vmem:[%s308_s1 + $0x60] sm:$0xff]  ;;  %v30_v21 = vld [vmem:[%s308_s1 + $0x68] sm:$0xff]  ;;  %v31_v23 = vld [vmem:[%s308_s1 + $0x70] sm:$0xff] }
   0x6   :  { %v206_v22 = vpack.c.bf16 %v30_v21, %v29_v20  ;;  %v32_v24 = vld [vmem:[%s308_s1 + $0x78] sm:$0xff]  ;;  %v16_v26 = vld [vmem:[%s309_s0] sm:$0x3]  ;;  %s222_s1 = smov 64  }
   0x7   :  { %v209_v25 = vpack.c.bf16 %v32_v24, %v31_v23  ;;  %v133_v27 = vld [vmem:[%s310_s2] ss:$0 sm:$0xff] }
   0x8   :  { %192 = vmatpush3.bf16.msra.mxu0 %v191_v7 }
   0x9   :  { %193 = vmatprep.subr.bf16.mxu0 %v219_v0 }
   0xc   :  { %195 = vmatpush3.bf16.msra.mxu0 %v194_v10 }
   0xd   :  { %196 = vmatprep.subr.bf16.mxu0 %v219_v0 }
  0x10   :  { %198 = vmatpush3.bf16.msra.mxu0 %v197_v13 }
  0x11   :  { %199 = vmatprep.subr.bf16.mxu0 %v219_v0 }
  0x14   :  { %201 = vmatpush3.bf16.msra.mxu0 %v200_v16 }
  0x15   :  { %202 = vmatprep.subr.bf16.mxu0 %v219_v0 }
  0x18   :  { %204 = vmatpush3.bf16.msra.mxu0 %v203_v19 }
  0x19   :  { %205 = vmatprep.subr.bf16.mxu0 %v219_v0 }
  0x1c   :  { %207 = vmatpush3.bf16.msra.mxu0 %v206_v22 }
  0x1d   :  { %208 = vmatprep.subr.bf16.mxu0 %v219_v0 }
  0x20   :  { %210 = vmatpush3.bf16.msra.mxu0 %v209_v25 }
  0x23   :  { %185 = vmatmul.mubr.f32.vlgmr.msra.gmra.mrb[0].mxu0 %v16_v26 }
  0xf6   :  { %v106_v28 = vpop.f32.mrb[0].mxu0 }
  0xf7   :  { %v107_v29 = vadd.f32 %v133_v27, %v106_v28  ;;  %v186_v30 = vpop.f32.mrb[1].mxu0 }
  0xf9   :  { %v134_v31 = vmul.f32 -1.442695, %v107_v29  ;;  %v118_v32 = vmax.f32 %v107_v29, 0.0 }
  0xfb   :  { %215 = vpow2.f32 %v134_v31  ;;  %120 = vrot.lane.b32.xlu0 %v118_v32, %s222_s1 }
 0x105   :  { %v216_v33 = vpop.eup %215 }
 0x106   :  { %v113_v34 = vadd.f32 1.0, %v216_v33 }
 0x108   :  { %217 = vrcp.f32 %v113_v34 }
 0x112   :  { %v218_v35 = vpop.eup %217 }
 0x113   :  { %117 = vst.msk [vmem:[%s311_s3] sm:$0x3] %vm116_vm1, %v218_v35 }
 0x16d   :  { %v121_v36 = vpop.permute.xlu0 %120 }
 0x16e   :  { %124 = vst.msk [vmem:[%s312_s4] sm:$0x3] %vm123_vm2, %v121_v36 }

</bundles_post_ra>
